<compile_context>
chip_gen: v5e
topology: v5e:2x2
jax: 0.10.0
libtpu: 0.0.40
codegen_flags: <defaults>
</compile_context>

<pallas_src>
import numpy as np
import jax
import jax.numpy as jnp
from jax.experimental import pallas as pl
from jax.experimental.pallas import tpu as pltpu


_ROW_TILE_BYTES = 2 << 20     # target bytes of one (TR, C) row tile
_BLOCK_BYTES = 4 << 20        # target bytes of one (TB, TR, C) per-step DMA block
_FASTPATH_BYTES = 4 << 20     # whole-array-resident threshold


def _divisors(n):
    ds = []
    i = 1
    while i * i <= n:
        if n % i == 0:
            ds.append(i)
            if i != n // i:
                ds.append(n // i)
        i += 1
    return sorted(ds)


def _pick_row_tile(R, row_bytes, sublane_mult):
    """Largest divisor of R that is a multiple of the sublane packing, fits the
    row-tile budget and (if possible) leaves >= 2 row tiles so the "parallel"
    grid axis can shard across v7x's two TensorCores."""
    cands = [d for d in _divisors(R) if d % sublane_mult == 0]
    if not cands:
        return R                       # full-dim block is always layout-legal
    within = [d for d in cands if d * row_bytes <= _ROW_TILE_BYTES]
    pool = within if within else [min(cands)]
    multi = [d for d in pool if d < R]
    if multi:
        pool = multi
    return max(pool)


def _pick_batch_tile(B, tile_bytes, cap=None):
    """Largest divisor of B whose folded (TB, TR, C) block fits the DMA budget."""
    cands = [d for d in _divisors(B) if d * tile_bytes <= _BLOCK_BYTES]
    if cap is not None:
        cands = [d for d in cands if d <= cap]
    return max(cands) if cands else 1


# ----------------------------- kernels ------------------------------------- #

def _batch_sum_small_kernel(x_ref, o_ref):
    # Fast path: x_ref (B, R, C) fully resident; o_ref (R, C).
    o_ref[...] = jnp.sum(x_ref[...].astype(jnp.float32), axis=0).astype(o_ref.dtype)


def _batch_sum_f32_kernel(x_ref, o_ref):
    # grid = (R//TR, B//TB); axis 1 (batch tiles) is the reduction axis.
    # x_ref: (TB, TR, C) one batch slab of the current row tile.
    # o_ref: (TR, C), same block across the whole batch sweep -> resident accumulator.
    b = pl.program_id(1)

    @pl.when(b == 0)
    def _init():
        o_ref[...] = jnp.zeros_like(o_ref)

    o_ref[...] += jnp.sum(x_ref[...], axis=0)


def _batch_sum_acc_kernel(x_ref, o_ref, acc_ref):
    # Non-f32 inputs: accumulate in an f32 VMEM scratch, cast once at the end.
    b = pl.program_id(1)

    @pl.when(b == 0)
    def _init():
        acc_ref[...] = jnp.zeros_like(acc_ref)

    acc_ref[...] += jnp.sum(x_ref[...].astype(jnp.float32), axis=0)

    @pl.when(b == pl.num_programs(1) - 1)
    def _finalize():
        o_ref[...] = acc_ref[...].astype(o_ref.dtype)


# ----------------------------- wrappers ------------------------------------ #

def _batch_sum(x2, *, force_tiled=False, max_batch_tile=None):
    """sum over axis 0 of x2 (B, R, C) -> (R, C), via Pallas."""
    B, R, C = x2.shape
    itemsize = np.dtype(x2.dtype).itemsize

    # Small-shape fast path: everything fits comfortably in VMEM -> one grid step,
    # no per-step overhead, no accumulator.
    if not force_tiled and B * R * C * itemsize <= _FASTPATH_BYTES:
        return pl.pallas_call(
            _batch_sum_small_kernel,
            out_shape=jax.ShapeDtypeStruct((R, C), x2.dtype),
            grid=(1,),
            in_specs=[pl.BlockSpec((B, R, C), lambda i: (0, 0, 0))],
            out_specs=pl.BlockSpec((R, C), lambda i: (0, 0)),
            compiler_params=pltpu.CompilerParams(
                dimension_semantics=("arbitrary",),
                vmem_limit_bytes=32 * 1024 * 1024,
            ),
        )(x2)

    # Layout: the last block dim always spans the full C (legal for any C); it is
    # lane-dense (unmasked vst / full-width DMA rows) when C = S*D is a multiple
    # of 128.  TR is a multiple of the dtype sublane packing (or the full R).
    sublane_mult = max(8, 32 // itemsize)       # f32 -> 8, bf16 -> 16, int8 -> 32
    row_bytes = C * itemsize
    TR = _pick_row_tile(R, row_bytes, sublane_mult)
    TB = _pick_batch_tile(B, TR * row_bytes, cap=max_batch_tile)
    assert R % TR == 0 and B % TB == 0

    use_f32_inplace = x2.dtype == jnp.float32
    kernel = _batch_sum_f32_kernel if use_f32_inplace else _batch_sum_acc_kernel
    scratch_shapes = [] if use_f32_inplace else [pltpu.VMEM((TR, C), jnp.float32)]

    # Explicit VMEM budget: double-buffered input + double-buffered output
    # (+ optional f32 accumulator), with headroom.  Stays inside v7x's 64 MiB
    # physical VMEM and raises v5e's 16 MiB scoped default when useful.
    block_in = TB * TR * C * itemsize
    block_out = TR * C * itemsize
    acc_bytes = 0 if use_f32_inplace else TR * C * 4
    vmem_needed = 2 * block_in + 2 * block_out + acc_bytes
    vmem_limit = int(min(max(2 * vmem_needed, 16 << 20), 64 << 20))

    grid = (R // TR, B // TB)
    return pl.pallas_call(
        kernel,
        out_shape=jax.ShapeDtypeStruct((R, C), x2.dtype),
        grid=grid,
        # One folded batch slab per reduction step, auto-pipelined DMA.
        in_specs=[pl.BlockSpec((TB, TR, C), lambda r, b: (b, r, 0))],
        # Same output block across the whole batch sweep -> VMEM-resident
        # accumulator; written back once per row tile (overlapped with the next
        # row tile's input DMAs since the parallel axis has >1 tile when possible).
        out_specs=pl.BlockSpec((TR, C), lambda r, b: (r, 0)),
        scratch_shapes=scratch_shapes,
        compiler_params=pltpu.CompilerParams(
            dimension_semantics=("parallel", "arbitrary"),
            vmem_limit_bytes=vmem_limit,
        ),
    )(x2)


def self_attention(x, w1, b1, w2, b2, *, force_tiled=False, max_batch_tile=None):
    """Forward pass of SelfAttention.

    w1/b1/w2/b2 are accepted for API fidelity but cannot affect the output
    (the softmax is over a singleton axis, so the attention weights are 1).
    """
    del w1, b1, w2, b2  # mathematically dead parameters (see header comment)
    B, S1, S2, D = x.shape
    # The torch broadcast in `x * weights.unsqueeze(-1)` requires S1 == S2.
    assert S1 == S2, "module's broadcast requires S1 == S2"

    # Lane-dense layout: fold the small feature axis into the last dim.
    R, C = S1, S2 * D
    x2 = x.reshape(B, R, C)

    summed = _batch_sum(x2, force_tiled=force_tiled, max_batch_tile=max_batch_tile)

    # B-way broadcast done OUTSIDE the kernel (kernel writes R*C, not B*R*C);
    # XLA can fuse this replication into the consumer.
    out2 = jnp.broadcast_to(summed[None, :, :], (B, R, C))
    return out2.reshape(B, S1, S2, D)


def self_attention_ref(x, w1, b1, w2, b2):
    """Pure-JAX literal transcription of the PyTorch forward (for verification)."""
    h = jnp.tanh(jnp.einsum("bijd,dh->bijh", x, w1) + b1)
    energy = jnp.einsum("bijh,h->bij", h, w2)[..., None] + b2    # (B,S,S,1)
    energy_t = jnp.swapaxes(energy, 1, 3)                        # (B,1,S,S)
    # torch .squeeze(-1): last dim is S != 1 here -> no-op
    weights = jax.nn.softmax(energy_t, axis=1)                   # (B,1,S,S), all ones
    prod = x * weights[..., None]                                # (B,B,S,S,D) via broadcast
    return prod.sum(axis=1)                                      # (B,S,S,D)


def _make_params(key, input_dim, hidden_dim):
    k1, k2, k3, k4 = jax.random.split(key, 4)
    bound1 = 1.0 / np.sqrt(input_dim)
    bound2 = 1.0 / np.sqrt(hidden_dim)
    w1 = jax.random.uniform(k1, (input_dim, hidden_dim), jnp.float32, -bound1, bound1)
    b1 = jax.random.uniform(k2, (hidden_dim,), jnp.float32, -bound1, bound1)
    w2 = jax.random.uniform(k3, (hidden_dim,), jnp.float32, -bound2, bound2)
    b2 = jax.random.uniform(k4, (), jnp.float32, -bound2, bound2)
    return w1, b1, w2, b2


if __name__ == "__main__":
    B, S, D, H = 2, 8, 16, 32   # batch, spatial (square), input_dim, hidden_dim

    key = jax.random.PRNGKey(0)
    kp, kx, kxb = jax.random.split(key, 3)
    w1, b1, w2, b2 = _make_params(kp, D, H)
    x = jax.random.normal(kx, (B, S, S, D), jnp.float32)

    ref = jax.block_until_ready(self_attention_ref(x, w1, b1, w2, b2))

    # 1) Small-shape fast path (single resident block).
    out_fast = jax.block_until_ready(self_attention(x, w1, b1, w2, b2))
    assert out_fast.shape == (B, S, S, D), out_fast.shape
    np.testing.assert_allclose(np.asarray(out_fast), np.asarray(ref), rtol=1e-6, atol=1e-6)

    # 2) Tiled path on the same shape, forcing a multi-step batch reduction.
    out_tiled = jax.block_until_ready(
        self_attention(x, w1, b1, w2, b2, force_tiled=True, max_batch_tile=1))
    np.testing.assert_allclose(np.asarray(out_tiled), np.asarray(ref), rtol=1e-6, atol=1e-6)

    # 3) Tiled path with multiple row tiles AND folded batch blocks.
    Bb, Sb, Db = 8, 16, 8
    w1b, b1b, w2b, b2b = _make_params(jax.random.PRNGKey(1), Db, H)
    xb = jax.random.normal(kxb, (Bb, Sb, Sb, Db), jnp.float32)
    refb = jax.block_until_ready(self_attention_ref(xb, w1b, b1b, w2b, b2b))
    outb = jax.block_until_ready(
        self_attention(xb, w1b, b1b, w2b, b2b, force_tiled=True, max_batch_tile=2))
    np.testing.assert_allclose(np.asarray(outb), np.asarray(refb), rtol=1e-6, atol=1e-6)

    print("KERNEL_OK")
</pallas_src>

<mosaic_0001>
module attributes {stable_mosaic.version = 11 : i64} {
  func.func @_batch_sum_small_kernel(%arg0: i32, %arg1: memref<2x8x128xf32, #tpu.memory_space<vmem>>, %arg2: memref<8x128xf32, #tpu.memory_space<vmem>>) attributes {dimension_semantics = [#tpu.dimension_semantics<arbitrary>], iteration_bounds = array<i64: 1>, scalar_prefetch = 0 : i64, scratch_operands = 0 : i64, tpu.core_type = #tpu.core_type<tc>, window_params = [{pipeline_mode = #tpu.pipeline_mode<synchronous>, transform_indices = @transform_0, window_bounds = array<i64: 2, 8, 128>}, {pipeline_mode = #tpu.pipeline_mode<synchronous>, transform_indices = @transform_1, window_bounds = array<i64: 8, 128>}]} {
    %c0 = arith.constant 0 : index
    %c0_0 = arith.constant 0 : index
    %c0_1 = arith.constant 0 : index
    %0 = vector.load %arg1[%c0, %c0_0, %c0_1] : memref<2x8x128xf32, #tpu.memory_space<vmem>>, vector<2x8x128xf32>
    %cst = arith.constant dense<0.000000e+00> : vector<8x128xf32>
    %1 = vector.multi_reduction <add>, %0, %cst [0] : vector<2x8x128xf32> to vector<8x128xf32>
    %c0_2 = arith.constant 0 : index
    %c0_3 = arith.constant 0 : index
    %2 = vector.load %arg2[%c0_2, %c0_3] : memref<8x128xf32, #tpu.memory_space<vmem>>, vector<8x128xf32>
    tpu.vector_store %arg2[%c0_2, %c0_3], %1 {strides = array<i32>} : memref<8x128xf32, #tpu.memory_space<vmem>>, vector<8x128xf32>,
    return
  }
  func.func @transform_0(%arg0: i32) -> (i32, i32, i32) {
    %c0_i32 = arith.constant 0 : i32
    %c0_i32_0 = arith.constant 0 : i32
    %c0_i32_1 = arith.constant 0 : i32
    %c0_i32_2 = arith.constant 0 : i32
    return %c0_i32, %c0_i32_0, %c0_i32_1 : i32, i32, i32
  }
  func.func @transform_1(%arg0: i32) -> (i32, i32) {
    %c0_i32 = arith.constant 0 : i32
    %c0_i32_0 = arith.constant 0 : i32
    %c0_i32_1 = arith.constant 0 : i32
    return %c0_i32, %c0_i32_0 : i32, i32
  }
}

</mosaic_0001>

<bundles_post_ra>
// kernel: tpu_custom_call.1
= control target key start
LH: loop header
LB: loop body
LE: loop exit
PB: predicated region body
PF: predicated region fallthrough
CT: control target
= control target key end

     0   :  { %6 = vsyncpa [#allocation3], 0  ;;  %s122_s0 = inlined_call_operand.hbm [shape: f32[2,8,128], index: 0, kind: input, shape index: {}]   ;;  %s123_s1 = inlined_call_operand.hbm [shape: f32[8,128], index: 1, kind: output, shape index: {}]  }
   0x1   :  { %7 = vsyncpa [#allocation4], 0  ;;  %s12_s8 = sshll.u32 %s122_s0, 4  ;;  %s102_s9 = smov [#allocation2]   ;;  %s13_s8 = int_to_ptr.hbm [resolvable:$true] %s12_s8 }
   0x2   :  { %s14_s10 = sshll.u32 %s102_s9, 4  ;;  %s103_s11 = smov 128   ;;  %s15_s10 = int_to_ptr.vmem [resolvable:$true] %s14_s10 }
   0x3   :  { %s104_s12 = smov 8  }
   0x4   :  { %20 = dma.hbm_to_vmem [thread:$0]  %s13_s8, 256, %s15_s10, [#allocation3], %s103_s11, %s103_s11, %s104_s12  }
   0x5   :  { %98 = dma.done.wait [#allocation3], 256  }
   0x6   :  { %99 = vsyncadd [#allocation3], 4294967040  ;;  %s105_s13 = smov [#allocation5]   ;;  %s36_s17 = sshll.u32 %s123_s1, 4  ;;  %v25_v0 = vld [vmem:[#allocation2] sm:$0xff]  ;;  %v26_v1 = vld [vmem:[#allocation2 + $0x8] sm:$0xff]  ;;  %s37_s17 = int_to_ptr.hbm [resolvable:$true] %s36_s17 }
   0x7   :  { %s34_s14 = sshll.u32 %s105_s13, 4  ;;  %v27_v2 = vadd.f32 %v26_v1, %v25_v0  ;;  %s35_s14 = int_to_ptr.vmem [resolvable:$true] %s34_s14 }
   0x9   :  { %28 = vst [vmem:[#allocation5] sm:$0xff] %v27_v2 }
   0xa   :  { %39 = dma.vmem_to_hbm [thread:$0]  %s35_s14, 128, %s37_s17, [#allocation4]  }
   0xb   :  { %100 = dma.done.wait [#allocation4], 128  }
   0xc   :  { %101 = vsyncadd [#allocation4], 4294967168 }
   0xd   :  { %44 = vsyncpa [#allocation3], 1 }
   0xe   :  { %45 = vsyncpa [#allocation4], 1 }

</bundles_post_ra>
